<compile_context>
chip_gen: v7x
topology: tpu7x:2x2x1
jax: 0.10.0
libtpu: 0.0.40
codegen_flags: <defaults>
</compile_context>

<pallas_src>
import functools

import jax
import jax.numpy as jnp
from jax.experimental import pallas as pl
from jax.experimental.pallas import tpu as pltpu


def _soft_xent_kernel(x_ref, y_ref, o_ref, *, n_rows, tm):
    """Processes a (tm, C) tile of rows and emits one partial-sum block."""
    i = pl.program_id(0)

    x = x_ref[...].astype(jnp.float32)
    y = y_ref[...].astype(jnp.float32)

    # Numerically-stable, algebraically-fused soft cross entropy:
    #   sum_c(-y * log_softmax(x)) = lse * sum_c(y) - sum_c(y * (x - max))
    m = jnp.max(x, axis=-1, keepdims=True)                              # (tm, 1)
    shifted = x - m                                                     # (tm, C)
    lse = jnp.log(jnp.sum(jnp.exp(shifted), axis=-1, keepdims=True))    # (tm, 1)
    sum_y = jnp.sum(y, axis=-1, keepdims=True)                          # (tm, 1)
    y_dot_shift = jnp.sum(y * shifted, axis=-1, keepdims=True)          # (tm, 1)
    row_loss = lse * sum_y - y_dot_shift                                # (tm, 1)

    # Mask rows of the (possibly ragged) last tile that lie beyond the batch.
    row_ids = i * tm + jax.lax.broadcasted_iota(jnp.int32, row_loss.shape, 0)
    row_loss = jnp.where(row_ids < n_rows, row_loss, 0.0)

    tile_loss = jnp.sum(row_loss)
    # Lane-dense per-tile output block; wrapper reads element [i, 0, 0].
    o_ref[...] = jnp.broadcast_to(tile_loss, o_ref.shape)


def _pick_row_tile(n, c, itemsize, vmem_input_budget=16 * 1024 * 1024):
    """Largest row tile s.t. 2 inputs x 2 pipeline buffers fit the VMEM budget."""
    tm = vmem_input_budget // (2 * 2 * c * itemsize)
    tm = max(8, (tm // 8) * 8)
    tm = min(tm, 1024)  # diminishing returns; keeps headroom on v7x (64 MiB VMEM)
    if n <= tm:
        return n  # single full-batch tile (any N allowed when block == full dim)
    return tm


def soft_cross_entropy_loss(x, y):
    """Pallas implementation of SoftCrossEntropyLoss.forward(x, y)."""
    n, c = x.shape
    assert y.shape == (n, c)

    itemsize = max(jnp.dtype(x.dtype).itemsize, jnp.dtype(y.dtype).itemsize)
    tm = _pick_row_tile(n, c, itemsize)
    num_tiles = pl.cdiv(n, tm)

    kernel = functools.partial(_soft_xent_kernel, n_rows=n, tm=tm)

    partials = pl.pallas_call(
        kernel,
        out_shape=jax.ShapeDtypeStruct((num_tiles, 8, 128), jnp.float32),
        grid_spec=pltpu.PrefetchScalarGridSpec(
            num_scalar_prefetch=0,
            grid=(num_tiles,),
            in_specs=[
                pl.BlockSpec((tm, c), lambda i: (i, 0)),
                pl.BlockSpec((tm, c), lambda i: (i, 0)),
            ],
            out_specs=pl.BlockSpec((1, 8, 128), lambda i: (i, 0, 0)),
        ),
        compiler_params=pltpu.CompilerParams(
            dimension_semantics=("parallel",),
            vmem_limit_bytes=32 * 1024 * 1024,
        ),
    )(x, y)

    # Per-tile f32 partials summed in the wrapper; then the "/ x.shape[0]".
    total = jnp.sum(partials[:, 0, 0])
    return total / jnp.float32(n)


if __name__ == "__main__":
    key = jax.random.PRNGKey(0)
    kx, ky = jax.random.split(key)

    N, C = 16, 128  # small synthetic logits / soft-label shapes
    x = jax.random.normal(kx, (N, C), dtype=jnp.float32)
    # Soft labels (e.g. label smoothing / mixup style): rows sum to 1.
    y_logits = jax.random.normal(ky, (N, C), dtype=jnp.float32)
    y = jax.nn.softmax(y_logits, axis=-1)

    out = soft_cross_entropy_loss(x, y)
    out = jax.block_until_ready(out)

    # Pure-JAX reference check.
    ref = jnp.sum(-y * jax.nn.log_softmax(x, axis=-1)) / N
    assert jnp.allclose(out, ref, rtol=1e-5, atol=1e-5), (out, ref)

    print("KERNEL_OK")
</pallas_src>

<mosaic_0001>
module attributes {stable_mosaic.version = 11 : i64} {
  func.func @_soft_xent_kernel(%arg0: i32, %arg1: memref<16x128xf32, #tpu.memory_space<vmem>>, %arg2: memref<16x128xf32, #tpu.memory_space<vmem>>, %arg3: memref<1x8x128xf32, #tpu.memory_space<vmem>>) attributes {dimension_semantics = [#tpu.dimension_semantics<parallel>], iteration_bounds = array<i64: 1>, scalar_prefetch = 0 : i64, scratch_operands = 0 : i64, tpu.core_type = #tpu.core_type<tc>, window_params = [{transform_indices = @transform_0, window_bounds = array<i64: 16, 128>}, {transform_indices = @transform_1, window_bounds = array<i64: 16, 128>}, {transform_indices = @transform_2, window_bounds = array<i64: 1, 8, 128>}]} {
    %c0 = arith.constant 0 : index
    %c0_0 = arith.constant 0 : index
    %0 = vector.load %arg1[%c0, %c0_0] : memref<16x128xf32, #tpu.memory_space<vmem>>, vector<16x128xf32>
    %c0_1 = arith.constant 0 : index
    %c0_2 = arith.constant 0 : index
    %1 = vector.load %arg2[%c0_1, %c0_2] : memref<16x128xf32, #tpu.memory_space<vmem>>, vector<16x128xf32>
    %cst = arith.constant dense<0xFF800000> : vector<16xf32>
    %2 = vector.multi_reduction <maximumf>, %0, %cst [1] : vector<16x128xf32> to vector<16xf32>
    %3 = vector.shape_cast %2 : vector<16xf32> to vector<16x1xf32>
    %4 = vector.broadcast %3 : vector<16x1xf32> to vector<16x128xf32>
    %5 = arith.subf %0, %4 : vector<16x128xf32>
    %6 = math.exp %5 : vector<16x128xf32>
    %cst_3 = arith.constant dense<0.000000e+00> : vector<16xf32>
    %7 = vector.multi_reduction <add>, %6, %cst_3 [1] : vector<16x128xf32> to vector<16xf32>
    %8 = vector.shape_cast %7 : vector<16xf32> to vector<16x1xf32>
    %9 = math.log %8 : vector<16x1xf32>
    %cst_4 = arith.constant dense<0.000000e+00> : vector<16xf32>
    %10 = vector.multi_reduction <add>, %1, %cst_4 [1] : vector<16x128xf32> to vector<16xf32>
    %11 = vector.shape_cast %10 : vector<16xf32> to vector<16x1xf32>
    %12 = arith.mulf %1, %5 : vector<16x128xf32>
    %cst_5 = arith.constant dense<0.000000e+00> : vector<16xf32>
    %13 = vector.multi_reduction <add>, %12, %cst_5 [1] : vector<16x128xf32> to vector<16xf32>
    %14 = vector.shape_cast %13 : vector<16xf32> to vector<16x1xf32>
    %15 = arith.mulf %9, %11 : vector<16x1xf32>
    %16 = arith.subf %15, %14 : vector<16x1xf32>
    %c16_i32 = arith.constant 16 : i32
    %17 = arith.muli %arg0, %c16_i32 : i32
    %18 = tpu.iota {dimensions = array<i32: 0>} : vector<16x1xi32>
    %19 = vector.broadcast %17 : i32 to vector<16x1xi32>
    %20 = arith.addi %19, %18 : vector<16x1xi32>
    %c16_i32_6 = arith.constant 16 : i32
    %21 = vector.broadcast %c16_i32_6 : i32 to vector<16x1xi32>
    %22 = arith.cmpi slt, %20, %21 : vector<16x1xi32>
    %cst_7 = arith.constant 0.000000e+00 : f32
    %23 = vector.broadcast %cst_7 : f32 to vector<16x1xf32>
    %24 = arith.select %22, %16, %23 : vector<16x1xi1>, vector<16x1xf32>
    %25 = vector.shape_cast %24 : vector<16x1xf32> to vector<1x16x1xf32>
    %cst_8 = arith.constant dense<0.000000e+00> : vector<1xf32>
    %26 = vector.multi_reduction <add>, %25, %cst_8 [1, 2] : vector<1x16x1xf32> to vector<1xf32>
    %27 = vector.shape_cast %26 : vector<1xf32> to vector<1x1x1xf32>
    %28 = vector.extract %27[0, 0, 0] : f32 from vector<1x1x1xf32>
    %29 = vector.broadcast %28 : f32 to vector<1x8x128xf32>
    %c0_9 = arith.constant 0 : index
    %c0_10 = arith.constant 0 : index
    %c0_11 = arith.constant 0 : index
    %30 = vector.load %arg3[%c0_9, %c0_10, %c0_11] : memref<1x8x128xf32, #tpu.memory_space<vmem>>, vector<1x8x128xf32>
    tpu.vector_store %arg3[%c0_9, %c0_10, %c0_11], %29 {strides = array<i32>} : memref<1x8x128xf32, #tpu.memory_space<vmem>>, vector<1x8x128xf32>,
    return
  }
  func.func @transform_0(%arg0: i32) -> (i32, i32) {
    %c0_i32 = arith.constant 0 : i32
    %c0_i32_0 = arith.constant 0 : i32
    return %arg0, %c0_i32 : i32, i32
  }
  func.func @transform_1(%arg0: i32) -> (i32, i32) {
    %c0_i32 = arith.constant 0 : i32
    %c0_i32_0 = arith.constant 0 : i32
    return %arg0, %c0_i32 : i32, i32
  }
  func.func @transform_2(%arg0: i32) -> (i32, i32, i32) {
    %c0_i32 = arith.constant 0 : i32
    %c0_i32_0 = arith.constant 0 : i32
    %c0_i32_1 = arith.constant 0 : i32
    return %arg0, %c0_i32, %c0_i32_0 : i32, i32, i32
  }
}

</mosaic_0001>

<bundles_post_ra>
// kernel: tpu_custom_call.1
= control target key start
LH: loop header
LB: loop body
LE: loop exit
PB: predicated region body
PF: predicated region fallthrough
CT: control target
= control target key end

     0   :  { %7 = vsyncpa [#allocation3], 0  ;;  %s261_s0 = inlined_call_operand.hbm [shape: f32[16,128], index: 0, kind: input, shape index: {}]   ;;  %s262_s1 = inlined_call_operand.hbm [shape: f32[16,128], index: 1, kind: input, shape index: {}]   ;;  %s263_s2 = inlined_call_operand.hbm [shape: f32[1,8,128], index: 2, kind: output, shape index: {}]  }
   0x1   :  { %8 = vsyncpa [#allocation6], 0 }
   0x2   :  { %9 = vsyncpa [#allocation4], 0  ;;  %s205_s9 = smov [#allocation2]   ;;  %s133_s13 = scalar_lea.hbm %s261_s0, 256 }
   0x3   :  { %s15_s10 = sshll.u32 %s205_s9, 4  ;;  %p134_p0 = scmp.ne.s32.totalorder %s261_s0, %s133_s13  ;;  %s16_s10 = int_to_ptr.vmem [resolvable:$true] %s15_s10 }
   0x4   :  { %p137_p1 = scmp.lt.u32.totalorder %s133_s13, %s261_s0 }
   0x6   :  { %p139_p2 = pnand %p137_p1, %p134_p0 }
   0x8   :  { %142 = shalt.err (!%p139_p2)
}
   0x9   :  { %s143_s18 = scalar_lea.vmem %s16_s10, 256  ;;  %p148_p4 = scmp.lt.s32.totalorder %s16_s10, %s16_s10 }
   0xa   :  { %p144_p3 = scmp.ne.s32.totalorder %s16_s10, %s143_s18  ;;  %p149_p5 = scmp.lt.s32.totalorder %s143_s18, %s143_s18 }
   0xc   :  { %p150_p6 = por %p149_p5, %p148_p4 }
   0xe   :  { %p151_p7 = pnand %p150_p6, %p144_p3 }
  0x10   :  { %154 = shalt.err (!%p151_p7)
}
  0x11   :  { %s206_s19 = smov 128   ;;  %s207_s20 = smov 8  }
  0x12   :  { %21 = dma.hbm_to_vmem [thread:$0]  %s261_s0, 256, %s16_s10, [#allocation3], %s206_s19, %s206_s19, %s207_s20  }
  0x13   :  { %s208_s23 = smov [#allocation5]   ;;  %s155_s27 = scalar_lea.hbm %s262_s1, 256 }
  0x14   :  { %s27_s24 = sshll.u32 %s208_s23, 4  ;;  %p156_p8 = scmp.ne.s32.totalorder %s262_s1, %s155_s27  ;;  %s28_s24 = int_to_ptr.vmem [resolvable:$true] %s27_s24 }
  0x15   :  { %p159_p9 = scmp.lt.u32.totalorder %s155_s27, %s262_s1 }
  0x17   :  { %p161_p10 = pnand %p159_p9, %p156_p8 }
  0x19   :  { %164 = shalt.err (!%p161_p10)
}
  0x1a   :  { %s165_s4 = scalar_lea.vmem %s28_s24, 256  ;;  %p170_p12 = scmp.lt.s32.totalorder %s28_s24, %s28_s24 }
  0x1b   :  { %p166_p11 = scmp.ne.s32.totalorder %s28_s24, %s165_s4  ;;  %p171_p13 = scmp.lt.s32.totalorder %s165_s4, %s165_s4 }
  0x1d   :  { %p172_p0 = por %p171_p13, %p170_p12 }
  0x1f   :  { %p173_p1 = pnand %p172_p0, %p166_p11 }
  0x21   :  { %176 = shalt.err (!%p173_p1)
}
  0x22   :  { %33 = dma.hbm_to_vmem [thread:$0]  %s262_s1, 256, %s28_s24, [#allocation6], %s206_s19, %s206_s19, %s207_s20  }
  0x23   :  { %199 = dma.done.wait [#allocation3], 256  }
  0x24   :  { %200 = vsyncadd [#allocation3], 4294967040 }
  0x25   :  { %201 = dma.done.wait [#allocation6], 256  }
  0x26   :  { %202 = vsyncadd [#allocation6], 4294967040  ;;  %v40_v0 = vld [vmem:[#allocation2] sm:$0xff]  ;;  %v41_v1 = vld [vmem:[#allocation2 + $0x8] sm:$0xff]  ;;  %vm87_vm0 = vcmask 7168   ;;  %s209_s1 = smov [#allocation7]  }
  0x27   :  { %44 = vmax.xlane.f32.xlu0 %v40_v0  ;;  %v42_v2 = vld [vmem:[#allocation5] sm:$0xff]  ;;  %v43_v12 = vld [vmem:[#allocation5 + $0x8] sm:$0xff]  ;;  %s108_s6 = sshll.u32 %s209_s1, 4  ;;  %s109_s6 = int_to_ptr.vmem [resolvable:$true] %s108_s6 }
  0x28   :  { %s177_s8 = scalar_lea.vmem %s109_s6, 128  ;;  %p182_p3 = scmp.lt.s32.totalorder %s109_s6, %s109_s6 }
  0x29   :  { %p178_p2 = scmp.ne.s32.totalorder %s109_s6, %s177_s8  ;;  %p183_p4 = scmp.lt.s32.totalorder %s177_s8, %s177_s8 }
  0x2b   :  { %46 = vmax.xlane.f32.xlu0 %v41_v1  ;;  %p184_p5 = por %p183_p4, %p182_p3 }
  0x2d   :  { %p185_p6 = pnand %p184_p5, %p178_p2 }
  0x2f   :  { %62 = vadd.xlane.f32.xlu0 %v42_v2 }
  0xb4   :  { %v45_v3 = vpop.xlane.xlu0 %44 }
  0xb5   :  { %v48_v4 = vsub.f32 %v40_v0, %v45_v3 }
  0xb7   :  { %v50_v5 = vmul.f32 1.442695, %v48_v4  ;;  %v66_v6 = vmul.f32 %v48_v4, %v42_v2 }
  0xb8   :  { %v47_v7 = vpop.xlane.xlu0 %46 }
  0xb9   :  { %v49_v8 = vsub.f32 %v41_v1, %v47_v7  ;;  %68 = vadd.xlane.f32.xlu0 %v66_v6  ;;  %125 = vpow2.f32 %v50_v5 }
  0xbb   :  { %v52_v9 = vmul.f32 1.442695, %v49_v8  ;;  %v67_v13 = vmul.f32 %v49_v8, %v43_v12 }
  0xbc   :  { %v63_v17 = vpop.xlane.xlu0 %62 }
  0xbd   :  { %127 = vpow2.f32 %v52_v9 }
  0xc3   :  { %v126_v10 = vpop.eup %125 }
  0xc4   :  { %54 = vadd.xlane.f32.xlu1 %v126_v10 }
  0xc7   :  { %v128_v11 = vpop.eup %127 }
  0xc8   :  { %56 = vadd.xlane.f32.xlu1 %v128_v11 }
  0xcc   :  { %64 = vadd.xlane.f32.xlu1 %v43_v12 }
  0xd0   :  { %70 = vadd.xlane.f32.xlu1 %v67_v13 }
 0x146   :  { %v69_v23 = vpop.xlane.xlu0 %68 }
 0x151   :  { %v55_v14 = vpop.xlane.xlu1 %54 }
 0x152   :  { %129 = vlog2.f32 %v55_v14 }
 0x155   :  { %v57_v15 = vpop.xlane.xlu1 %56 }
 0x156   :  { %131 = vlog2.f32 %v57_v15 }
 0x159   :  { %v65_v19 = vpop.xlane.xlu1 %64 }
 0x15c   :  { %v130_v16 = vpop.eup %129 }
 0x15d   :  { %v59_v18 = vmul.f32 0.6931472, %v130_v16  ;;  %v71_v26 = vpop.xlane.xlu1 %70 }
 0x15f   :  { %v72_v20 = vmul.f32 %v63_v17, %v59_v18 }
 0x160   :  { %v132_v21 = vpop.eup %131 }
 0x161   :  { %v61_v22 = vmul.f32 0.6931472, %v132_v21  ;;  %v74_v25 = vsub.f32 %v72_v20, %v69_v23 }
 0x163   :  { %v73_v24 = vmul.f32 %v65_v19, %v61_v22  ;;  %v88_v28 = vsel %vm87_vm0, %v74_v25, 0.0 }
 0x165   :  { %v75_v27 = vsub.f32 %v73_v24, %v71_v26 }
 0x167   :  { %v89_v29 = vsel %vm87_vm0, %v75_v27, 0.0 }
 0x168   :  { %v90_v30 = vadd.f32 %v89_v29, %v88_v28 }
 0x16a   :  { %91 = vadd.xlane.f32.xlu0 %v90_v30 }
 0x1f7   :  { %v92_v31 = vpop.xlane.xlu0 %91 }
 0x1f8   :  { %v93_v32 = vrot.slane %v92_v31, 4 }
 0x1fa   :  { %v94_v33 = vadd.f32 %v93_v32, %v92_v31 }
 0x1fc   :  { %v95_v34 = vrot.slane %v94_v33, 2 }
 0x1fe   :  { %v96_v35 = vadd.f32 %v95_v34, %v94_v33 }
 0x200   :  { %v97_v36 = vrot.slane %v96_v35, 1 }
 0x202   :  { %v98_v37 = vadd.f32 %v97_v36, %v96_v35 }
 0x204   :  { %118 = vpush %v98_v37 }
 0x235   :  { %s119_s7 = spop %118 }
 0x236   :  { %v100_v38 = vstv %s119_s7 }
 0x237   :  { %101 = vst [vmem:[#allocation7] sm:$0xff] %v100_v38 }
 0x238   :  { %188 = shalt.err (!%p185_p6)
}
 0x239   :  { %s189_s11 = scalar_lea.hbm %s263_s2, 128 }
 0x23a   :  { %p190_p7 = scmp.ne.s32.totalorder %s263_s2, %s189_s11  ;;  %p193_p8 = scmp.lt.u32.totalorder %s189_s11, %s263_s2 }
 0x23c   :  { %p195_p9 = pnand %p193_p8, %p190_p7 }
 0x23e   :  { %198 = shalt.err (!%p195_p9)
}
 0x23f   :  { %111 = dma.vmem_to_hbm [thread:$0]  %s109_s6, 128, %s263_s2, [#allocation4]  }
 0x240   :  { %203 = dma.done.wait [#allocation4], 128  }
 0x241   :  { %204 = vsyncadd [#allocation4], 4294967168 }
 0x242   :  { %115 = vsyncpa [#allocation3], 1 }
 0x243   :  { %116 = vsyncpa [#allocation6], 1 }
 0x244   :  { %117 = vsyncpa [#allocation4], 1 }

</bundles_post_ra>
